<compile_context>
chip_gen: v5e
topology: v5e:2x2
jax: 0.10.0
libtpu: 0.0.40
codegen_flags: <defaults>
</compile_context>

<pallas_src>
import math

import jax
import jax.numpy as jnp
import numpy as np
from jax.experimental import pallas as pl
from jax.experimental.pallas import tpu as pltpu

BR_TARGET = 16384                # packed rows per grid step (tunable)
VMEM_LIMIT = 48 * 1024 * 1024    # explicit scoped-VMEM budget (v7x-safe)


def _round_up(a, b):
    return (a + b - 1) // b * b


# ---------------------------------------------------------------------------
# Pass 1 (tiny): column sums and Gram matrix of the packed input X2.
#   xsum (1, PCin)    = sum over rows of X2
#   xtx  (PCin, PCin) = X2^T X2
# Zero-padded rows contribute exactly zero -> no correction needed.
# ---------------------------------------------------------------------------
def xgram_kernel(x_ref, xsum_ref, xtx_ref):
    @pl.when(pl.program_id(0) == 0)
    def _():
        xsum_ref[...] = jnp.zeros_like(xsum_ref)
        xtx_ref[...] = jnp.zeros_like(xtx_ref)

    xb = x_ref[...]
    xsum_ref[...] += jnp.sum(xb.astype(jnp.float32), axis=0, keepdims=True)
    # X^T X: contract over the (large) row axis of both operands.
    xtx_ref[...] += jax.lax.dot_general(
        xb, xb, dimension_numbers=(((0,), (0,)), ((), ())),
        preferred_element_type=jnp.float32)


# ---------------------------------------------------------------------------
# Pass 2: fused transposed-conv matmul + folded BatchNorm affine + ReLU.
# Single HBM write of the big tensor, in the (possibly bf16) output dtype.
# ---------------------------------------------------------------------------
def fused_convt_bn_relu_kernel(x_ref, w_ref, b_ref, o_ref):
    y = jnp.dot(x_ref[...], w_ref[...], preferred_element_type=jnp.float32)
    o_ref[...] = jnp.maximum(y + b_ref[...], 0.0).astype(o_ref.dtype)


def up_forward(x, skip, weight, bias, gamma, beta, eps=1e-5,
               compute_dtype=jnp.bfloat16, out_dtype=None,
               running_mean=None, running_var=None, momentum=0.1):
    """Equivalent of Up.forward with BatchNorm3d in training mode."""
    N, Cin, D, H, W = x.shape
    Co = weight.shape[1]
    K = 2
    K3 = K * K * K
    C8 = K3 * Co
    M = N * D * H * W
    if out_dtype is None:
        out_dtype = compute_dtype

    # ---- lane packing: pack P consecutive rows so the kernel output's last
    # dim (P*C8) is a multiple of 128 -> unmasked, lane-dense vector stores.
    P = 1
    if C8 % 128 != 0:
        cand = 128 // math.gcd(C8, 128)
        if cand <= 8:
            P = cand
        # TODO(synk): odd/tiny Co with cand > 8 falls back to P=1 (masked stores).
    PCin = P * Cin
    PC8 = P * C8

    # ---- flatten input / weight for the single-matmul formulation (glue)
    xf = jnp.transpose(x, (0, 2, 3, 4, 1)).reshape(M, Cin).astype(jnp.float32)
    wf = jnp.transpose(weight, (0, 2, 3, 4, 1)).reshape(Cin, C8).astype(jnp.float32)
    b_col = jnp.tile(bias.astype(jnp.float32), K3)                    # (C8,)

    # zero-pad rows so M is a multiple of P (exact no-op for the Gram stats)
    M_rows = _round_up(M, P)
    if M_rows != M:
        xf = jnp.pad(xf, ((0, M_rows - M), (0, 0)))
    x2 = xf.reshape(M_rows // P, PCin)
    eyeP = jnp.eye(P, dtype=jnp.float32)

    # ---- row tiling with tail zero-padding (also exact no-op for the stats)
    Mp = M_rows // P
    nblk = max(1, -(-Mp // BR_TARGET))
    BR = _round_up(-(-Mp // nblk), 32)
    Mp_pad = nblk * BR
    if Mp_pad != Mp:
        x2 = jnp.pad(x2, ((0, Mp_pad - Mp), (0, 0)))
    x2c = x2.astype(compute_dtype)

    grid = (nblk,)

    # ---- pass 1: tiny Gram reduction over the small (Mp_pad, PCin) input
    xsum2, xtx2 = pl.pallas_call(
        xgram_kernel,
        out_shape=(jax.ShapeDtypeStruct((1, PCin), jnp.float32),
                   jax.ShapeDtypeStruct((PCin, PCin), jnp.float32)),
        grid_spec=pltpu.PrefetchScalarGridSpec(
            num_scalar_prefetch=0,
            grid=grid,
            in_specs=[pl.BlockSpec((BR, PCin), lambda i: (i, 0))],
            out_specs=(pl.BlockSpec((1, PCin), lambda i: (0, 0)),
                       pl.BlockSpec((PCin, PCin), lambda i: (0, 0))),
        ),
        compiler_params=pltpu.CompilerParams(
            dimension_semantics=("arbitrary",),
            vmem_limit_bytes=VMEM_LIMIT),
    )(x2c)

    # ---- unpack packed Gram back to Cin x Cin (tiny XLA math)
    xsum = xsum2.reshape(P, Cin).sum(axis=0)                          # (Cin,)
    xtx = jnp.einsum('pipj->ij', xtx2.reshape(P, Cin, P, Cin))        # (Cin,Cin)
    xbar = xsum / M
    m2x = xtx - jnp.outer(xsum, xsum) / M       # sum_i (x_i - xbar)(x_i - xbar)^T

    # BN statistics of y = X @ W + b via the Gram identity (bias-free SS)
    colmean = xbar @ wf + b_col                  # (C8,) per-column mean
    ss = jnp.sum(wf * (m2x @ wf), axis=0)        # (C8,) centered sum of squares
    mu_kc = colmean.reshape(K3, Co)
    ss_kc = jnp.maximum(ss, 0.0).reshape(K3, Co)
    cnt = M * K3
    mean = mu_kc.mean(axis=0)                                         # (Co,)
    var = ss_kc.sum(axis=0) / cnt + jnp.mean((mu_kc - mean[None, :]) ** 2, axis=0)
    var = jnp.maximum(var, 0.0)
    invstd = jax.lax.rsqrt(var + eps)
    scale = gamma.astype(jnp.float32) * invstd
    shift = beta.astype(jnp.float32) - mean * scale

    # fold BN into the matmul:  relu( X @ (W*scale) + (b*scale + shift) )
    scale_col = jnp.tile(scale, K3)                                   # (C8,)
    shift_col = jnp.tile(shift, K3)
    wf_s = wf * scale_col[None, :]
    b_s = b_col * scale_col + shift_col
    w2s = jnp.kron(eyeP, wf_s).astype(compute_dtype)                  # (PCin, PC8)
    b2s = jnp.tile(b_s, P).reshape(1, PC8)

    # ---- pass 2: fused matmul + BN affine + ReLU, single HBM write (out_dtype)
    y2 = pl.pallas_call(
        fused_convt_bn_relu_kernel,
        out_shape=jax.ShapeDtypeStruct((Mp_pad, PC8), out_dtype),
        grid_spec=pltpu.PrefetchScalarGridSpec(
            num_scalar_prefetch=0,
            grid=grid,
            in_specs=[
                pl.BlockSpec((BR, PCin), lambda i: (i, 0)),
                pl.BlockSpec((PCin, PC8), lambda i: (0, 0)),
                pl.BlockSpec((1, PC8), lambda i: (0, 0)),
            ],
            out_specs=pl.BlockSpec((BR, PC8), lambda i: (i, 0)),
        ),
        compiler_params=pltpu.CompilerParams(
            dimension_semantics=("parallel",),   # no accumulator -> megacore-friendly
            vmem_limit_bytes=VMEM_LIMIT),
    )(x2c, w2s, b2s)

    # ---- scatter back to NCDHW and concat with skip (XLA epilogue, out_dtype)
    # TODO(synk): direct NCDHW block writes from pass 2 would remove this round trip.
    y = y2.reshape(Mp_pad * P, C8)[:M]
    y5 = y.reshape(N, D, H, W, K, K, K, Co)
    out = jnp.transpose(y5, (0, 7, 1, 4, 2, 5, 3, 6)).reshape(N, Co, K * D, K * H, K * W)
    out = jnp.concatenate([out, skip.astype(out_dtype)], axis=1)

    if running_mean is not None and running_var is not None:
        # PyTorch training-mode BN running-stat update (unbiased var)
        var_unbiased = var * (cnt / max(cnt - 1, 1))
        new_rm = (1.0 - momentum) * running_mean + momentum * mean
        new_rv = (1.0 - momentum) * running_var + momentum * var_unbiased
        return out, new_rm, new_rv
    return out


def up_reference(x, skip, weight, bias, gamma, beta, eps=1e-5):
    """Pure-JAX reference built directly from the ConvTranspose3d definition."""
    N, Cin, D, H, W = x.shape
    Co = weight.shape[1]
    K = 2
    out = jnp.zeros((N, Co, K * D, K * H, K * W), jnp.float32)
    for kd in range(K):
        for kh in range(K):
            for kw in range(K):
                contrib = jnp.einsum("ncdhw,co->nodhw", x, weight[:, :, kd, kh, kw])
                out = out.at[:, :, kd::K, kh::K, kw::K].set(contrib)
    out = out + bias[None, :, None, None, None]
    mean = out.mean(axis=(0, 2, 3, 4))
    var = out.var(axis=(0, 2, 3, 4))  # biased, as BN uses for normalization
    out = (out - mean[None, :, None, None, None]) * jax.lax.rsqrt(var + eps)[None, :, None, None, None]
    out = out * gamma[None, :, None, None, None] + beta[None, :, None, None, None]
    out = jnp.maximum(out, 0.0)
    return jnp.concatenate([out, skip], axis=1)


if __name__ == "__main__":
    key = jax.random.PRNGKey(0)
    k1, k2, k3, k4, k5, k6 = jax.random.split(key, 6)

    # Up(in_channels=8, out_channels=16): conv -> Co = 8 channels, skip has 8 channels
    N, Cin, D, H, W = 2, 8, 4, 4, 4
    out_channels = 16
    Co = out_channels // 2
    K = 2

    x = jax.random.normal(k1, (N, Cin, D, H, W), jnp.float32)
    skip = jax.random.normal(k2, (N, Co, K * D, K * H, K * W), jnp.float32)
    # ConvTranspose3d weight shape: (in_channels, out_channels//2, 2, 2, 2)
    weight = 0.1 * jax.random.normal(k3, (Cin, Co, K, K, K), jnp.float32)
    bias = 0.1 * jax.random.normal(k4, (Co,), jnp.float32)
    gamma = 1.0 + 0.1 * jax.random.normal(k5, (Co,), jnp.float32)
    beta = 0.1 * jax.random.normal(k6, (Co,), jnp.float32)

    ref = up_reference(x, skip, weight, bias, gamma, beta)

    # f32 path (f32 compute, f32 output): tight numerical check against the reference
    out_f32 = jax.block_until_ready(
        up_forward(x, skip, weight, bias, gamma, beta, compute_dtype=jnp.float32))
    np.testing.assert_allclose(np.asarray(out_f32), np.asarray(ref), rtol=1e-4, atol=1e-4)

    # bf16 compute + bf16 output (default perf config on v5e/v6e/v7x): looser tolerance
    out_bf16 = jax.block_until_ready(
        up_forward(x, skip, weight, bias, gamma, beta, compute_dtype=jnp.bfloat16))
    np.testing.assert_allclose(np.asarray(out_bf16.astype(jnp.float32)),
                               np.asarray(ref), rtol=5e-2, atol=5e-2)

    print("KERNEL_OK")
</pallas_src>

<mosaic_0001>
module attributes {stable_mosaic.version = 11 : i64} {
  func.func @xgram_kernel(%arg0: i32, %arg1: memref<64x16xf32, #tpu.memory_space<vmem>>, %arg2: memref<1x16xf32, #tpu.memory_space<vmem>>, %arg3: memref<16x16xf32, #tpu.memory_space<vmem>>) attributes {dimension_semantics = [#tpu.dimension_semantics<arbitrary>], iteration_bounds = array<i64: 1>, scalar_prefetch = 0 : i64, scratch_operands = 0 : i64, tpu.core_type = #tpu.core_type<tc>, window_params = [{transform_indices = @transform_0, window_bounds = array<i64: 64, 16>}, {pipeline_mode = #tpu.pipeline_mode<synchronous>, transform_indices = @transform_1, window_bounds = array<i64: 1, 16>}, {pipeline_mode = #tpu.pipeline_mode<synchronous>, transform_indices = @transform_2, window_bounds = array<i64: 16, 16>}]} {
    %c0_i32 = arith.constant 0 : i32
    %0 = arith.cmpi eq, %arg0, %c0_i32 : i32
    %1 = arith.extui %0 : i1 to i32
    %c0_i32_0 = arith.constant 0 : i32
    %2 = arith.cmpi ne, %1, %c0_i32_0 : i32
    scf.if %2 {
      %cst_11 = arith.constant 0.000000e+00 : f32
      %13 = vector.broadcast %cst_11 : f32 to vector<1x16xf32>
      %c0_12 = arith.constant 0 : index
      %c0_13 = arith.constant 0 : index
      %14 = vector.load %arg2[%c0_12, %c0_13] : memref<1x16xf32, #tpu.memory_space<vmem>>, vector<1x16xf32>
      tpu.vector_store %arg2[%c0_12, %c0_13], %13 {strides = array<i32>} : memref<1x16xf32, #tpu.memory_space<vmem>>, vector<1x16xf32>,
      %cst_14 = arith.constant 0.000000e+00 : f32
      %15 = vector.broadcast %cst_14 : f32 to vector<16x16xf32>
      %c0_15 = arith.constant 0 : index
      %c0_16 = arith.constant 0 : index
      %16 = vector.load %arg3[%c0_15, %c0_16] : memref<16x16xf32, #tpu.memory_space<vmem>>, vector<16x16xf32>
      tpu.vector_store %arg3[%c0_15, %c0_16], %15 {strides = array<i32>} : memref<16x16xf32, #tpu.memory_space<vmem>>, vector<16x16xf32>,
    } else {
    }
    %c0 = arith.constant 0 : index
    %c0_1 = arith.constant 0 : index
    %3 = vector.load %arg1[%c0, %c0_1] : memref<64x16xf32, #tpu.memory_space<vmem>>, vector<64x16xf32>
    %c0_2 = arith.constant 0 : index
    %c0_3 = arith.constant 0 : index
    %4 = vector.load %arg2[%c0_2, %c0_3] : memref<1x16xf32, #tpu.memory_space<vmem>>, vector<1x16xf32>
    %cst = arith.constant dense<0.000000e+00> : vector<16xf32>
    %5 = vector.multi_reduction <add>, %3, %cst [0] : vector<64x16xf32> to vector<16xf32>
    %6 = vector.shape_cast %5 : vector<16xf32> to vector<1x16xf32>
    %7 = arith.addf %4, %6 : vector<1x16xf32>
    %c0_4 = arith.constant 0 : index
    %c0_5 = arith.constant 0 : index
    %8 = vector.load %arg2[%c0_4, %c0_5] : memref<1x16xf32, #tpu.memory_space<vmem>>, vector<1x16xf32>
    tpu.vector_store %arg2[%c0_4, %c0_5], %7 {strides = array<i32>} : memref<1x16xf32, #tpu.memory_space<vmem>>, vector<1x16xf32>,
    %c0_6 = arith.constant 0 : index
    %c0_7 = arith.constant 0 : index
    %9 = vector.load %arg3[%c0_6, %c0_7] : memref<16x16xf32, #tpu.memory_space<vmem>>, vector<16x16xf32>
    %cst_8 = arith.constant dense<0.000000e+00> : vector<16x16xf32>
    %10 = tpu.matmul %3, %3, %cst_8 {dimension_numbers = #tpu.dot_dimension_numbers<[0], [0], [1], [1], [0, 1, 1, 1], [], []>} : vector<64x16xf32>, vector<64x16xf32>, vector<16x16xf32> -> vector<16x16xf32>
    %11 = arith.addf %9, %10 : vector<16x16xf32>
    %c0_9 = arith.constant 0 : index
    %c0_10 = arith.constant 0 : index
    %12 = vector.load %arg3[%c0_9, %c0_10] : memref<16x16xf32, #tpu.memory_space<vmem>>, vector<16x16xf32>
    tpu.vector_store %arg3[%c0_9, %c0_10], %11 {strides = array<i32>} : memref<16x16xf32, #tpu.memory_space<vmem>>, vector<16x16xf32>,
    return
  }
  func.func @transform_0(%arg0: i32) -> (i32, i32) {
    %c0_i32 = arith.constant 0 : i32
    %c0_i32_0 = arith.constant 0 : i32
    return %arg0, %c0_i32 : i32, i32
  }
  func.func @transform_1(%arg0: i32) -> (i32, i32) {
    %c0_i32 = arith.constant 0 : i32
    %c0_i32_0 = arith.constant 0 : i32
    %c0_i32_1 = arith.constant 0 : i32
    return %c0_i32, %c0_i32_0 : i32, i32
  }
  func.func @transform_2(%arg0: i32) -> (i32, i32) {
    %c0_i32 = arith.constant 0 : i32
    %c0_i32_0 = arith.constant 0 : i32
    %c0_i32_1 = arith.constant 0 : i32
    return %c0_i32, %c0_i32_0 : i32, i32
  }
}

</mosaic_0001>

<bundles_post_ra>
// kernel: tpu_custom_call.1
= control target key start
LH: loop header
LB: loop body
LE: loop exit
PB: predicated region body
PF: predicated region fallthrough
CT: control target
= control target key end

     0   :  { %8 = vsyncpa [#allocation3], 0  ;;  %vm18_vm0 = vcmask 130048   ;;  %s286_s0 = inlined_call_operand.vmem [shape: f32[64,16], index: 0, kind: input, shape index: {}]   ;;  %s287_s1 = inlined_call_operand.hbm [shape: f32[1,16], index: 1, kind: output, shape index: {0}]   ;;  %s288_s2 = inlined_call_operand.hbm [shape: f32[16,16], index: 2, kind: output, shape index: {1}]  }
   0x1   :  { %v21_v0 = vld [vmem:[%s286_s0] sm:$0xff]  ;;  %v22_v1 = vld [vmem:[%s286_s0 + $0x8] sm:$0xff]  ;;  %v23_v2 = vld [vmem:[%s286_s0 + $0x10] sm:$0xff] }
   0x2   :  { %57 = vxpose.xlu0.b32.start [1/8] (short) (narrow) %v21_v0, 16  ;;  %v31_v3 = vsel %vm18_vm0, %v21_v0, 0.0  ;;  %v32_v4 = vsel %vm18_vm0, %v22_v1, 0.0  ;;  %v34_v5 = vsel %vm18_vm0, %v23_v2, 0.0  ;;  %v24_v7 = vld [vmem:[%s286_s0 + $0x18] sm:$0xff] }
   0x3   :  { %v33_v6 = vadd.f32 %v32_v4, %v31_v3 }
   0x4   :  { %9 = vsyncpa [#allocation5], 0  ;;  %v36_v8 = vsel %vm18_vm0, %v24_v7, 0.0  ;;  %v25_v10 = vld [vmem:[%s286_s0 + $0x20] sm:$0xff]  ;;  %v26_v14 = vld [vmem:[%s286_s0 + $0x28] sm:$0xff]  ;;  %v224_v23 = vmov 0.0  }
   0x5   :  { %v35_v9 = vadd.f32 %v34_v5, %v33_v6  ;;  %v38_v11 = vsel %vm18_vm0, %v25_v10, 0.0  ;;  %v40_v15 = vsel %vm18_vm0, %v26_v14, 0.0  ;;  %v27_v17 = vld [vmem:[%s286_s0 + $0x30] sm:$0xff]  ;;  %v28_v19 = vld [vmem:[%s286_s0 + $0x38] sm:$0xff]  ;;  %19 = vst.msk [vmem:[#allocation4] sm:$0xff] %vm18_vm0, %v224_v23  ;;  %vm89_vm1 = vcmask 523264  }
   0x6   :  { %v42_v18 = vsel %vm18_vm0, %v27_v17, 0.0  ;;  %104 = vmatpush.msra.mxu0 %v28_v19  ;;  %159 = vmatpush.msra.mxu1 %v28_v19  ;;  %v44_v21 = vsel %vm18_vm0, %v28_v19, 0.0  ;;  %20 = vst.msk [vmem:[#allocation4 + $0x8] sm:$0xff] %vm18_vm0, %v224_v23  ;;  %vm16_vm2 = vcmask 122880   ;;  %s225_s0 = smov [#allocation2]   ;;  %s130_s28 = sshll.u32 %s287_s1, 4  ;;  %s131_s28 = int_to_ptr.hbm [resolvable:$true] %s130_s28 }
   0x7   :  { %v37_v12 = vadd.f32 %v36_v8, %v35_v9  ;;  %17 = vst.msk [vmem:[#allocation2] sm:$0x1] %vm16_vm2, %v224_v23  ;;  %s128_s25 = sshll.u32 %s225_s0, 4  ;;  %s226_s29 = smov [#allocation4]   ;;  %s129_s25 = int_to_ptr.vmem [resolvable:$true] %s128_s25 }
   0x8   :  { %105 = vmatpush.msra.mxu0 %v27_v17  ;;  %160 = vmatpush.msra.mxu1 %v27_v17  ;;  %s138_s30 = sshll.u32 %s226_s29, 4  ;;  %s140_s5 = sshll.u32 %s288_s2, 4  ;;  %s139_s30 = int_to_ptr.vmem [resolvable:$true] %s138_s30  ;;  %s141_s5 = int_to_ptr.hbm [resolvable:$true] %s140_s5 }
   0x9   :  { %v39_v13 = vadd.f32 %v38_v11, %v37_v12  ;;  %s227_s1 = smov 128   ;;  %s228_s6 = smov 8  }
   0xa   :  { %58 = vxpose.xlu0.b32.cont [2/8] (short) (narrow) %v22_v1, 16  ;;  %106 = vmatpush.msra.mxu0 %v26_v14 }
   0xb   :  { %v41_v16 = vadd.f32 %v40_v15, %v39_v13  ;;  %161 = vmatpush.msra.mxu1 %v26_v14 }
   0xc   :  { %107 = vmatpush.msra.mxu0 %v25_v10  ;;  %v55_v34 = vld [vmem:[#allocation4] sm:$0xff] }
   0xd   :  { %v43_v20 = vadd.f32 %v42_v18, %v41_v16  ;;  %162 = vmatpush.msra.mxu1 %v25_v10  ;;  %v56_v37 = vld [vmem:[#allocation4 + $0x8] sm:$0xff] }
   0xe   :  { %108 = vmatpush.msra.mxu0 %v24_v7  ;;  %v29_v32 = vld [vmem:[#allocation2] sm:$0x1] }
   0xf   :  { %v45_v22 = vadd.f32 %v44_v21, %v43_v20  ;;  %163 = vmatpush.msra.mxu1 %v24_v7 }
  0x10   :  { %109 = vmatpush.msra.mxu0 %v23_v2 }
  0x11   :  { %164 = vmatpush.msra.mxu1 %v23_v2  ;;  %v46_v26 = vrot.slane %v45_v22, 4 }
  0x12   :  { %59 = vxpose.xlu0.b32.cont [3/8] (short) (narrow) %v23_v2, 16  ;;  %110 = vmatpush.msra.mxu0 %v22_v1 }
  0x13   :  { %165 = vmatpush.msra.mxu1 %v22_v1  ;;  %v47_v27 = vadd.f32 %v46_v26, %v45_v22 }
  0x14   :  { %111 = vmatpush.msra.mxu0 %v21_v0 }
  0x15   :  { %166 = vmatpush.msra.mxu1 %v21_v0  ;;  %v48_v28 = vrot.slane %v47_v27, 2 }
  0x17   :  { %v49_v29 = vadd.f32 %v48_v28, %v47_v27 }
  0x19   :  { %v50_v30 = vrot.slane %v49_v29, 1 }
  0x1a   :  { %60 = vxpose.xlu0.b32.cont [4/8] (short) (narrow) %v24_v7, 16 }
  0x1b   :  { %v51_v31 = vadd.f32 %v50_v30, %v49_v29 }
  0x1d   :  { %v52_v33 = vadd.f32 %v51_v31, %v29_v32 }
  0x1f   :  { %54 = vst.msk [vmem:[#allocation2] sm:$0x1] %vm16_vm2, %v52_v33 }
  0x20   :  { %133 = dma.vmem_to_hbm [thread:$0]  %s129_s25, 16, %s131_s28, [#allocation3]  }
  0x22   :  { %61 = vxpose.xlu0.b32.cont [5/8] (short) (narrow) %v25_v10, 16 }
  0x2a   :  { %62 = vxpose.xlu0.b32.cont [6/8] (short) (narrow) %v26_v14, 16 }
  0x32   :  { %63 = vxpose.xlu0.b32.cont [7/8] (short) (narrow) %v27_v17, 16 }
  0x3a   :  { %64 = vxpose.xlu0.b32.end [8/8] (short) (narrow) %v28_v19, 16 }
  0xa6   :  { %v73_v24 = vpop.trf.xlu0 }
  0xa7   :  { %157 = vmatmul.msk.f32.vlgmr.msra.gmra.mxu0 %vm89_vm1, %v73_v24 }
  0xae   :  { %v74_v25 = vpop.trf.xlu0 }
  0xaf   :  { %158 = vmatmul.msk.f32.vlgmr.msra.gmra.mxu1 %vm89_vm1, %v74_v25 }
 0x124   :  { %v113_v35 = vpop.f32.mrf.mxu0 }
 0x125   :  { %v119_v36 = vadd.f32 %v113_v35, %v55_v34 }
 0x127   :  { %121 = vst.msk [vmem:[#allocation4] sm:$0xff] %vm18_vm0, %v119_v36 }
 0x12c   :  { %v116_v38 = vpop.f32.mrf.mxu1 }
 0x12d   :  { %v120_v39 = vadd.f32 %v116_v38, %v56_v37 }
 0x12f   :  { %122 = vst.msk [vmem:[#allocation4 + $0x8] sm:$0xff] %vm18_vm0, %v120_v39 }
 0x130   :  { %146 = dma.vmem_to_hbm [thread:$0]  %s139_s30, 256, %s141_s5, [#allocation5], %s227_s1, %s227_s1, %s228_s6  }
 0x131   :  { %220 = dma.done.wait [#allocation3], 16  }
 0x132   :  { %221 = vsyncadd [#allocation3], 4294967280 }
 0x133   :  { %222 = dma.done.wait [#allocation5], 256  }
 0x134   :  { %223 = vsyncadd [#allocation5], 4294967040 }
 0x135   :  { %155 = vsyncpa [#allocation3], 1 }
 0x136   :  { %156 = vsyncpa [#allocation5], 1 }

</bundles_post_ra>
